<compile_context>
chip_gen: v7x
topology: tpu7x:2x2x1
jax: 0.10.0
libtpu: 0.0.40
codegen_flags: <defaults>
</compile_context>

<pallas_src>
import functools

import jax
import jax.numpy as jnp
from jax import lax
from jax.experimental import pallas as pl
from jax.experimental.pallas import tpu as pltpu

EPS = 1e-5
FAST_PATH_BYTES = 1 << 20          # <= 1 MiB slab -> fused fully-resident kernel
TARGET_TILE_BYTES = 1 << 20        # ~1 MiB row tiles for the streaming path
LANE_WIDTH = 128
VMEM_LIMIT = 32 * 1024 * 1024      # safe on v5e/v6e (128 MiB) and v7x (64 MiB)


# ---------------------------------------------------------------------------
# Kernel A (fast path): whole slab resident in VMEM, stats + normalize fused.
# ---------------------------------------------------------------------------
def _fused_small_kernel(x_ref, gamma_ref, beta_ref, o_ref, *, n_rows):
    x = x_ref[...].astype(jnp.float32)
    inv_n = jnp.float32(1.0 / n_rows)
    s = jnp.sum(x, axis=0, keepdims=True)
    sq = jnp.sum(x * x, axis=0, keepdims=True)
    mean = s * inv_n
    var = jnp.maximum(sq * inv_n - mean * mean, 0.0)   # cancellation guard
    inv_std = lax.rsqrt(var + EPS)
    scale = gamma_ref[...] * inv_std
    shift = beta_ref[...] - mean * scale
    o_ref[...] = (x * scale + shift).astype(o_ref.dtype)


# ---------------------------------------------------------------------------
# Kernel B (tiled path, pass 1): per-tile partial sum / sum-of-squares.
# Each grid step writes its own (1, 1, C) partial block -> fully parallel grid.
# ---------------------------------------------------------------------------
def _stats_kernel(x_ref, psum_ref, psq_ref, *, row_tile, n_rows, mask_tail):
    x = x_ref[...].astype(jnp.float32)
    if mask_tail:  # static: only traced when the last tile is ragged
        row = pl.program_id(0) * row_tile + lax.broadcasted_iota(
            jnp.int32, x.shape, 0)
        x = jnp.where(row < n_rows, x, 0.0)
    s = jnp.sum(x, axis=0, keepdims=True)
    sq = jnp.sum(x * x, axis=0, keepdims=True)
    psum_ref[...] = s.reshape(1, 1, -1)
    psq_ref[...] = sq.reshape(1, 1, -1)


# ---------------------------------------------------------------------------
# Kernel C (tiled path, pass 2): y = x * scale + shift (affine pre-folded).
# ---------------------------------------------------------------------------
def _norm_kernel(x_ref, scale_ref, shift_ref, o_ref):
    x = x_ref[...].astype(jnp.float32)
    o_ref[...] = (x * scale_ref[...] + shift_ref[...]).astype(o_ref.dtype)


def _batchnorm1d_train(x2d, gamma, beta):
    """BatchNorm1d forward (training mode, batch stats) on an (N, C) array."""
    n, c = x2d.shape
    gamma = gamma.reshape(1, c).astype(jnp.float32)
    beta = beta.reshape(1, c).astype(jnp.float32)
    nbytes = n * c * x2d.dtype.itemsize

    # ---------------- fast path: launch-overhead bound sizes ----------------
    if nbytes <= FAST_PATH_BYTES:
        return pl.pallas_call(
            functools.partial(_fused_small_kernel, n_rows=n),
            out_shape=jax.ShapeDtypeStruct((n, c), x2d.dtype),
            grid=(1,),
            in_specs=[pl.BlockSpec((n, c), lambda i: (0, 0)),
                      pl.BlockSpec((1, c), lambda i: (0, 0)),
                      pl.BlockSpec((1, c), lambda i: (0, 0))],
            out_specs=pl.BlockSpec((n, c), lambda i: (0, 0)),
            compiler_params=pltpu.CompilerParams(
                dimension_semantics=("arbitrary",),
                vmem_limit_bytes=VMEM_LIMIT),
        )(x2d, gamma, beta)

    # ---------------- tiled streaming path ----------------
    # Lane-densify: (N, C) -> (N/rep, C*rep) so the last dim fills 128 lanes
    # (unmasked vector stores). Channels repeat across lanes with period C.
    rep = 1
    if c < LANE_WIDTH and LANE_WIDTH % c == 0 and n % (LANE_WIDTH // c) == 0:
        rep = LANE_WIDTH // c
    rows = n // rep
    cd = c * rep
    xd = x2d.reshape(rows, cd)

    # ~1 MiB row tiles (multiple of 8 sublanes), capped by the slab itself.
    row_tile = max(8, min(4096, (TARGET_TILE_BYTES // (cd * 4)) // 8 * 8))
    row_tile = min(row_tile, ((rows + 7) // 8) * 8)
    grid_n = pl.cdiv(rows, row_tile)
    mask_tail = (rows % row_tile) != 0

    row_spec = pl.BlockSpec((row_tile, cd), lambda i: (i, 0))
    vec_spec = pl.BlockSpec((1, cd), lambda i: (0, 0))
    part_spec = pl.BlockSpec((1, 1, cd), lambda i: (i, 0, 0))

    # Pass 1: per-tile partial statistics (parallel grid, no accumulator).
    psum, psq = pl.pallas_call(
        functools.partial(_stats_kernel, row_tile=row_tile, n_rows=rows,
                          mask_tail=mask_tail),
        out_shape=(jax.ShapeDtypeStruct((grid_n, 1, cd), jnp.float32),
                   jax.ShapeDtypeStruct((grid_n, 1, cd), jnp.float32)),
        grid=(grid_n,),
        in_specs=[row_spec],
        out_specs=(part_spec, part_spec),
        compiler_params=pltpu.CompilerParams(
            dimension_semantics=("parallel",),
            vmem_limit_bytes=VMEM_LIMIT),
    )(xd)

    # Tiny XLA glue: combine partials, fold lane replicas, fold affine terms.
    s = jnp.sum(psum, axis=(0, 1))       # (cd,)
    sq = jnp.sum(psq, axis=(0, 1))
    if rep > 1:
        s = jnp.sum(s.reshape(rep, c), axis=0)
        sq = jnp.sum(sq.reshape(rep, c), axis=0)

    inv_n = jnp.float32(1.0 / n)
    mean = s * inv_n
    var = jnp.maximum(sq * inv_n - mean * mean, 0.0)   # biased var, clamped
    inv_std = lax.rsqrt(var + EPS)
    scale_c = gamma.reshape(c) * inv_std
    shift_c = beta.reshape(c) - mean * scale_c
    scale = jnp.tile(scale_c, rep).reshape(1, cd)
    shift = jnp.tile(shift_c, rep).reshape(1, cd)

    # Pass 2: streaming normalization (lane-dense output, 2 small operands).
    yd = pl.pallas_call(
        _norm_kernel,
        out_shape=jax.ShapeDtypeStruct((rows, cd), x2d.dtype),
        grid=(grid_n,),
        in_specs=[row_spec, vec_spec, vec_spec],
        out_specs=row_spec,
        compiler_params=pltpu.CompilerParams(
            dimension_semantics=("parallel",),
            vmem_limit_bytes=VMEM_LIMIT),
    )(xd, scale, shift)

    return yd.reshape(n, c)


def graph_feature_batchnorm(node_attr, edge_attr, params, size):
    """Forward pass of GraphFeatureBatchNorm on (node_attr, edge_attr)."""
    node_shape = node_attr.shape
    edge_shape = edge_attr.shape
    node_out = _batchnorm1d_train(
        node_attr.reshape(-1, size), params["node_gamma"], params["node_beta"]
    ).reshape(node_shape)
    edge_out = _batchnorm1d_train(
        edge_attr.reshape(-1, size), params["edge_gamma"], params["edge_beta"]
    ).reshape(edge_shape)
    return node_out, edge_out


def _reference_bn2d(x2d, gamma, beta):
    x = x2d.astype(jnp.float32)
    m = jnp.mean(x, axis=0, keepdims=True)
    v = jnp.mean((x - m) ** 2, axis=0, keepdims=True)
    return (x - m) / jnp.sqrt(v + EPS) * gamma.reshape(1, -1) + beta.reshape(1, -1)


if __name__ == "__main__":
    SIZE = 32
    key = jax.random.PRNGKey(0)
    k1, k2, k3, k4 = jax.random.split(key, 4)

    # --- small graph (matches the module's typical use): fused fast path ---
    node_attr = jax.random.normal(k1, (2, 16, SIZE), dtype=jnp.float32)
    edge_attr = jax.random.normal(k2, (2, 24, SIZE), dtype=jnp.float32)

    # Deterministic parameter init == nn.BatchNorm1d defaults (weight=1, bias=0).
    params = {
        "node_gamma": jnp.ones((SIZE,), jnp.float32),
        "node_beta": jnp.zeros((SIZE,), jnp.float32),
        "edge_gamma": jnp.ones((SIZE,), jnp.float32),
        "edge_beta": jnp.zeros((SIZE,), jnp.float32),
    }
    # TODO(synk): running_mean / running_var side-effect updates of BatchNorm1d
    # are training-state bookkeeping, not part of the returned forward value.

    node_out, edge_out = graph_feature_batchnorm(node_attr, edge_attr, params, SIZE)
    jax.block_until_ready((node_out, edge_out))

    ref_node = _reference_bn2d(node_attr.reshape(-1, SIZE),
                               params["node_gamma"],
                               params["node_beta"]).reshape(node_attr.shape)
    ref_edge = _reference_bn2d(edge_attr.reshape(-1, SIZE),
                               params["edge_gamma"],
                               params["edge_beta"]).reshape(edge_attr.shape)
    assert jnp.allclose(node_out, ref_node, atol=1e-3, rtol=1e-3)
    assert jnp.allclose(edge_out, ref_edge, atol=1e-3, rtol=1e-3)

    # --- larger slab: tiled path, lane-dense layout (C | 128), ragged tail ---
    x_big = jax.random.normal(k3, (2, 6000, SIZE), dtype=jnp.float32).reshape(-1, SIZE)
    g_big = 1.0 + 0.1 * jnp.arange(SIZE, dtype=jnp.float32)
    b_big = 0.01 * jnp.arange(SIZE, dtype=jnp.float32)
    y_big = _batchnorm1d_train(x_big, g_big, b_big)
    jax.block_until_ready(y_big)
    assert jnp.allclose(y_big, _reference_bn2d(x_big, g_big, b_big),
                        atol=1e-3, rtol=1e-3)

    # --- larger slab with C that does not divide 128: tiled plain layout ---
    C2 = 48
    x_odd = jax.random.normal(k4, (2, 5000, C2), dtype=jnp.float32).reshape(-1, C2)
    g_odd = jnp.ones((C2,), jnp.float32)
    b_odd = jnp.zeros((C2,), jnp.float32)
    y_odd = _batchnorm1d_train(x_odd, g_odd, b_odd)
    jax.block_until_ready(y_odd)
    assert jnp.allclose(y_odd, _reference_bn2d(x_odd, g_odd, b_odd),
                        atol=1e-3, rtol=1e-3)

    print("KERNEL_OK")
</pallas_src>

<mosaic_0001>
module attributes {stable_mosaic.version = 11 : i64} {
  func.func @_fused_small_kernel(%arg0: i32, %arg1: memref<32x32xf32, #tpu.memory_space<vmem>>, %arg2: memref<1x32xf32, #tpu.memory_space<vmem>>, %arg3: memref<1x32xf32, #tpu.memory_space<vmem>>, %arg4: memref<32x32xf32, #tpu.memory_space<vmem>>) attributes {dimension_semantics = [#tpu.dimension_semantics<arbitrary>], iteration_bounds = array<i64: 1>, scalar_prefetch = 0 : i64, scratch_operands = 0 : i64, tpu.core_type = #tpu.core_type<tc>, window_params = [{pipeline_mode = #tpu.pipeline_mode<synchronous>, transform_indices = @transform_0, window_bounds = array<i64: 32, 32>}, {pipeline_mode = #tpu.pipeline_mode<synchronous>, transform_indices = @transform_1, window_bounds = array<i64: 1, 32>}, {pipeline_mode = #tpu.pipeline_mode<synchronous>, transform_indices = @transform_2, window_bounds = array<i64: 1, 32>}, {pipeline_mode = #tpu.pipeline_mode<synchronous>, transform_indices = @transform_3, window_bounds = array<i64: 32, 32>}]} {
    %c0 = arith.constant 0 : index
    %c0_0 = arith.constant 0 : index
    %0 = vector.load %arg1[%c0, %c0_0] : memref<32x32xf32, #tpu.memory_space<vmem>>, vector<32x32xf32>
    %cst = arith.constant dense<0.000000e+00> : vector<32xf32>
    %1 = vector.multi_reduction <add>, %0, %cst [0] : vector<32x32xf32> to vector<32xf32>
    %2 = vector.shape_cast %1 : vector<32xf32> to vector<1x32xf32>
    %3 = arith.mulf %0, %0 : vector<32x32xf32>
    %cst_1 = arith.constant dense<0.000000e+00> : vector<32xf32>
    %4 = vector.multi_reduction <add>, %3, %cst_1 [0] : vector<32x32xf32> to vector<32xf32>
    %5 = vector.shape_cast %4 : vector<32xf32> to vector<1x32xf32>
    %cst_2 = arith.constant 3.125000e-02 : f32
    %6 = vector.broadcast %cst_2 : f32 to vector<1x32xf32>
    %7 = arith.mulf %2, %6 : vector<1x32xf32>
    %cst_3 = arith.constant 3.125000e-02 : f32
    %8 = vector.broadcast %cst_3 : f32 to vector<1x32xf32>
    %9 = arith.mulf %5, %8 : vector<1x32xf32>
    %10 = arith.mulf %7, %7 : vector<1x32xf32>
    %11 = arith.subf %9, %10 : vector<1x32xf32>
    %cst_4 = arith.constant 0.000000e+00 : f32
    %12 = vector.broadcast %cst_4 : f32 to vector<1x32xf32>
    %13 = arith.maximumf %11, %12 : vector<1x32xf32>
    %cst_5 = arith.constant 9.99999974E-6 : f32
    %14 = vector.broadcast %cst_5 : f32 to vector<1x32xf32>
    %15 = arith.addf %13, %14 : vector<1x32xf32>
    %16 = math.rsqrt %15 : vector<1x32xf32>
    %c0_6 = arith.constant 0 : index
    %c0_7 = arith.constant 0 : index
    %17 = vector.load %arg2[%c0_6, %c0_7] : memref<1x32xf32, #tpu.memory_space<vmem>>, vector<1x32xf32>
    %18 = arith.mulf %17, %16 : vector<1x32xf32>
    %c0_8 = arith.constant 0 : index
    %c0_9 = arith.constant 0 : index
    %19 = vector.load %arg3[%c0_8, %c0_9] : memref<1x32xf32, #tpu.memory_space<vmem>>, vector<1x32xf32>
    %20 = arith.mulf %7, %18 : vector<1x32xf32>
    %21 = arith.subf %19, %20 : vector<1x32xf32>
    %22 = vector.broadcast %18 : vector<1x32xf32> to vector<32x32xf32>
    %23 = arith.mulf %0, %22 : vector<32x32xf32>
    %24 = vector.broadcast %21 : vector<1x32xf32> to vector<32x32xf32>
    %25 = arith.addf %23, %24 : vector<32x32xf32>
    %c0_10 = arith.constant 0 : index
    %c0_11 = arith.constant 0 : index
    %26 = vector.load %arg4[%c0_10, %c0_11] : memref<32x32xf32, #tpu.memory_space<vmem>>, vector<32x32xf32>
    tpu.vector_store %arg4[%c0_10, %c0_11], %25 {strides = array<i32>} : memref<32x32xf32, #tpu.memory_space<vmem>>, vector<32x32xf32>,
    return
  }
  func.func @transform_0(%arg0: i32) -> (i32, i32) {
    %c0_i32 = arith.constant 0 : i32
    %c0_i32_0 = arith.constant 0 : i32
    %c0_i32_1 = arith.constant 0 : i32
    return %c0_i32, %c0_i32_0 : i32, i32
  }
  func.func @transform_1(%arg0: i32) -> (i32, i32) {
    %c0_i32 = arith.constant 0 : i32
    %c0_i32_0 = arith.constant 0 : i32
    %c0_i32_1 = arith.constant 0 : i32
    return %c0_i32, %c0_i32_0 : i32, i32
  }
  func.func @transform_2(%arg0: i32) -> (i32, i32) {
    %c0_i32 = arith.constant 0 : i32
    %c0_i32_0 = arith.constant 0 : i32
    %c0_i32_1 = arith.constant 0 : i32
    return %c0_i32, %c0_i32_0 : i32, i32
  }
  func.func @transform_3(%arg0: i32) -> (i32, i32) {
    %c0_i32 = arith.constant 0 : i32
    %c0_i32_0 = arith.constant 0 : i32
    %c0_i32_1 = arith.constant 0 : i32
    return %c0_i32, %c0_i32_0 : i32, i32
  }
}

</mosaic_0001>

<bundles_post_ra>
// kernel: tpu_custom_call.1
= control target key start
LH: loop header
LB: loop body
LE: loop exit
PB: predicated region body
PF: predicated region fallthrough
CT: control target
= control target key end

     0   :  { %8 = vsyncpa [#allocation3], 0  ;;  %s243_s0 = inlined_call_operand.hbm [shape: f32[32,32], index: 0, kind: input, shape index: {}]   ;;  %s244_s1 = inlined_call_operand.vmem [shape: f32[1,32], index: 1, kind: input, shape index: {}]   ;;  %s245_s2 = inlined_call_operand.vmem [shape: f32[1,32], index: 2, kind: input, shape index: {}]   ;;  %s246_s3 = inlined_call_operand.hbm [shape: f32[32,32], index: 3, kind: output, shape index: {}]  }
   0x1   :  { %9 = vsyncpa [#allocation4], 0  ;;  %s171_s12 = smov [#allocation2]   ;;  %s123_s16 = scalar_lea.hbm %s243_s0, 512 }
   0x2   :  { %s15_s13 = sshll.u32 %s171_s12, 4  ;;  %p124_p0 = scmp.ne.s32.totalorder %s243_s0, %s123_s16  ;;  %s16_s13 = int_to_ptr.vmem [resolvable:$true] %s15_s13 }
   0x3   :  { %p127_p1 = scmp.lt.u32.totalorder %s123_s16, %s243_s0 }
   0x5   :  { %p129_p2 = pnand %p127_p1, %p124_p0 }
   0x7   :  { %132 = shalt.err (!%p129_p2)
}
   0x8   :  { %s133_s21 = scalar_lea.vmem %s16_s13, 512  ;;  %p138_p4 = scmp.lt.s32.totalorder %s16_s13, %s16_s13 }
   0x9   :  { %p134_p3 = scmp.ne.s32.totalorder %s16_s13, %s133_s21  ;;  %p139_p5 = scmp.lt.s32.totalorder %s133_s21, %s133_s21 }
   0xb   :  { %p140_p6 = por %p139_p5, %p138_p4 }
   0xd   :  { %p141_p7 = pnand %p140_p6, %p134_p3 }
   0xf   :  { %144 = shalt.err (!%p141_p7)
}
  0x10   :  { %s172_s22 = smov 128   ;;  %s173_s23 = smov 8  }
  0x11   :  { %21 = dma.hbm_to_vmem [thread:$0]  %s243_s0, 512, %s16_s13, [#allocation3], %s172_s22, %s172_s22, %s173_s23  }
  0x12   :  { %167 = dma.done.wait [#allocation3], 512  }
  0x13   :  { %168 = vsyncadd [#allocation3], 4294966784  ;;  %vm33_vm0 = vcmask 261120   ;;  %v29_v0 = vld [vmem:[#allocation2] sm:$0xff]  ;;  %v30_v1 = vld [vmem:[#allocation2 + $0x8] sm:$0xff]  ;;  %v77_v40 = vlaneseq  ;;  %s174_s29 = smov [#allocation5]  }
  0x14   :  { %v31_v2 = vld [vmem:[#allocation2 + $0x10] sm:$0xff]  ;;  %v32_v3 = vld [vmem:[#allocation2 + $0x18] sm:$0xff]  ;;  %v34_v4 = vsel %vm33_vm0, %v29_v0, 0.0  ;;  %v35_v5 = vsel %vm33_vm0, %v30_v1, 0.0  ;;  %v47_v7 = vmul.f32 %v29_v0, %v29_v0  ;;  %v48_v9 = vmul.f32 %v30_v1, %v30_v1  ;;  %v71_v42 = vld [vmem:[%s244_s1] sm:$0x1] }
  0x15   :  { %v37_v6 = vsel %vm33_vm0, %v31_v2, 0.0  ;;  %v36_v8 = vadd.f32 %v35_v5, %v34_v4  ;;  %v49_v10 = vmul.f32 %v31_v2, %v31_v2  ;;  %v39_v11 = vsel %vm33_vm0, %v32_v3, 0.0  ;;  %v73_v46 = vld [vmem:[%s245_s2] sm:$0x1]  ;;  %s105_s30 = sshll.u32 %s174_s29, 4  ;;  %s106_s30 = int_to_ptr.vmem [resolvable:$true] %s105_s30 }
  0x16   :  { %v50_v12 = vmul.f32 %v32_v3, %v32_v3  ;;  %v51_v13 = vsel %vm33_vm0, %v47_v7, 0.0  ;;  %v52_v15 = vsel %vm33_vm0, %v48_v9, 0.0  ;;  %v78_v41 = vshrl.u32 %v77_v40, 7  ;;  %s145_s1 = scalar_lea.vmem %s106_s30, 512  ;;  %p150_p9 = scmp.lt.s32.totalorder %s106_s30, %s106_s30 }
  0x17   :  { %v38_v14 = vadd.f32 %v37_v6, %v36_v8  ;;  %v54_v16 = vsel %vm33_vm0, %v49_v10, 0.0  ;;  %v53_v17 = vadd.f32 %v52_v15, %v51_v13  ;;  %p146_p8 = scmp.ne.s32.totalorder %s106_s30, %s145_s1  ;;  %p151_p10 = scmp.lt.s32.totalorder %s145_s1, %s145_s1 }
  0x18   :  { %v56_v19 = vsel %vm33_vm0, %v50_v12, 0.0  ;;  %v79_v43 = vsub.s32 0, %v78_v41 }
  0x19   :  { %v40_v18 = vadd.f32 %v39_v11, %v38_v14  ;;  %v55_v20 = vadd.f32 %v54_v16, %v53_v17  ;;  %p152_p11 = por %p151_p10, %p150_p9 }
  0x1b   :  { %v41_v21 = vrot.slane %v40_v18, 4  ;;  %v57_v22 = vadd.f32 %v56_v19, %v55_v20  ;;  %p153_p12 = pnand %p152_p11, %p146_p8 }
  0x1d   :  { %v42_v23 = vadd.f32 %v41_v21, %v40_v18  ;;  %v58_v24 = vrot.slane %v57_v22, 4 }
  0x1f   :  { %v43_v25 = vrot.slane %v42_v23, 2  ;;  %v59_v26 = vadd.f32 %v58_v24, %v57_v22 }
  0x21   :  { %v44_v27 = vadd.f32 %v43_v25, %v42_v23  ;;  %v60_v28 = vrot.slane %v59_v26, 2 }
  0x23   :  { %v45_v29 = vrot.slane %v44_v27, 1  ;;  %v61_v30 = vadd.f32 %v60_v28, %v59_v26 }
  0x25   :  { %v46_v31 = vadd.f32 %v45_v29, %v44_v27  ;;  %v62_v32 = vrot.slane %v61_v30, 1 }
  0x27   :  { %v64_v33 = vmul.f32 0.03125, %v46_v31  ;;  %v63_v34 = vadd.f32 %v62_v32, %v61_v30 }
  0x29   :  { %v66_v35 = vmul.f32 %v64_v33, %v64_v33  ;;  %v65_v36 = vmul.f32 0.03125, %v63_v34 }
  0x2b   :  { %v67_v37 = vsub.f32 %v65_v36, %v66_v35 }
  0x2d   :  { %v68_v38 = vmax.f32 %v67_v37, 0.0 }
  0x2f   :  { %v69_v39 = vadd.f32 1e-05, %v68_v38 }
  0x31   :  { %121 = vrsqrt.f32 %v69_v39 }
  0x3b   :  { %v122_v44 = vpop.eup %121 }
  0x3c   :  { %v72_v45 = vmul.f32 %v122_v44, %v71_v42 }
  0x3e   :  { %v74_v47 = vmul.f32 %v72_v45, %v64_v33  ;;  %v80_v48 = vrot.slane %v72_v45, %v79_v43 }
  0x40   :  { %v75_v49 = vsub.f32 %v73_v46, %v74_v47  ;;  %v82_v50 = vmul.f32 %v80_v48, %v29_v0  ;;  %v83_v51 = vmul.f32 %v80_v48, %v30_v1  ;;  %v84_v52 = vmul.f32 %v80_v48, %v31_v2 }
  0x41   :  { %v85_v53 = vmul.f32 %v80_v48, %v32_v3 }
  0x42   :  { %v90_v54 = vrot.slane %v75_v49, %v79_v43 }
  0x44   :  { %v92_v55 = vadd.f32 %v90_v54, %v82_v50  ;;  %v93_v56 = vadd.f32 %v90_v54, %v83_v51  ;;  %v94_v57 = vadd.f32 %v90_v54, %v84_v52  ;;  %v95_v58 = vadd.f32 %v90_v54, %v85_v53 }
  0x46   :  { %96 = vst.msk [vmem:[#allocation5] sm:$0xff] %vm33_vm0, %v92_v55  ;;  %97 = vst.msk [vmem:[#allocation5 + $0x8] sm:$0xff] %vm33_vm0, %v93_v56 }
  0x47   :  { %98 = vst.msk [vmem:[#allocation5 + $0x10] sm:$0xff] %vm33_vm0, %v94_v57  ;;  %99 = vst.msk [vmem:[#allocation5 + $0x18] sm:$0xff] %vm33_vm0, %v95_v58 }
  0x48   :  { %156 = shalt.err (!%p153_p12)
}
  0x49   :  { %s157_s5 = scalar_lea.hbm %s246_s3, 512 }
  0x4a   :  { %p158_p13 = scmp.ne.s32.totalorder %s246_s3, %s157_s5  ;;  %p161_p0 = scmp.lt.u32.totalorder %s157_s5, %s246_s3 }
  0x4c   :  { %p163_p1 = pnand %p161_p0, %p158_p13 }
  0x4e   :  { %166 = shalt.err (!%p163_p1)
}
  0x4f   :  { %111 = dma.vmem_to_hbm [thread:$0]  %s106_s30, 512, %s246_s3, [#allocation4], %s172_s22, %s172_s22, %s173_s23  }
  0x50   :  { %169 = dma.done.wait [#allocation4], 512  }
  0x51   :  { %170 = vsyncadd [#allocation4], 4294966784 }
  0x52   :  { %115 = vsyncpa [#allocation3], 1 }
  0x53   :  { %116 = vsyncpa [#allocation4], 1 }

</bundles_post_ra>
